<compile_context>
chip_gen: v7x
topology: tpu7x:2x2x1
jax: 0.10.0
libtpu: 0.0.40
codegen_flags: <defaults>
</compile_context>

<pallas_src>
import jax
import jax.numpy as jnp
from jax.experimental import pallas as pl
from jax.experimental.pallas import tpu as pltpu


def _conv_block_kernel(x_ref, w_ref, b_ref, gamma_ref, beta_ref, o_ref):
    # x_ref:     (1, K_pad, HW)  f32   unfolded (im2col) input for one sample
    # w_ref:     (C_out, K_pad)  f32   unfolded conv weights
    # b_ref:     (C_out, 1)      f32   conv bias
    # gamma_ref: (C_out, 1)      f32   GroupNorm scale
    # beta_ref:  (C_out, 1)      f32   GroupNorm shift
    # o_ref:     (1, C_out, HW)  f32
    C_out = o_ref.shape[1]
    HW = o_ref.shape[2]
    G = 4
    cpg = C_out // G
    eps = 1e-5
    inv_n = 1.0 / float(cpg * HW)  # multiply by reciprocal, never divide per-element

    # --- Conv2d(3x3, padding=1) + bias: a single MXU matmul over the unfolded taps.
    acc = jnp.dot(w_ref[...], x_ref[0], preferred_element_type=jnp.float32)  # (C_out, HW)
    acc = acc + b_ref[...]                                                   # bias bcast

    # --- GroupNorm(4, C_out): stats over (channels-in-group) x (H*W), per sample.
    ch = jax.lax.broadcasted_iota(jnp.int32, (C_out, 1), 0)   # channel index (sublane)

    # Per-channel sums via one lane reduction, then tiny per-group reductions.
    s_c = jnp.sum(acc, axis=1, keepdims=True)                 # (C_out, 1)
    mean_c = jnp.zeros((C_out, 1), jnp.float32)
    for g in range(G):                                        # G = 4 (static unroll)
        m_g = jnp.sum(s_c[g * cpg:(g + 1) * cpg, :]) * inv_n  # group mean (scalar)
        in_g = (ch >= g * cpg) & (ch < (g + 1) * cpg)
        mean_c = jnp.where(in_g, m_g, mean_c)

    centered = acc - mean_c                                   # (C_out, HW)
    ss_c = jnp.sum(centered * centered, axis=1, keepdims=True)
    var_c = jnp.zeros((C_out, 1), jnp.float32)
    for g in range(G):
        v_g = jnp.sum(ss_c[g * cpg:(g + 1) * cpg, :]) * inv_n
        in_g = (ch >= g * cpg) & (ch < (g + 1) * cpg)
        var_c = jnp.where(in_g, v_g, var_c)
    rstd_c = jax.lax.rsqrt(var_c + eps)                       # (C_out, 1)

    # Fold gamma into rstd before the wide multiply (one full-width mul saved).
    z = centered * (rstd_c * gamma_ref[...]) + beta_ref[...]  # (C_out, HW)

    # --- SiLU, stored lane-dense (HW is a multiple of 128).
    o_ref[0, :, :] = z * jax.nn.sigmoid(z)


def conv_block(x, weight, bias, gamma, beta):
    """Fused Conv2d(3x3, pad=1) + GroupNorm(4) + SiLU.

    x: (B, C_in, H, W); weight: (C_out, C_in, 3, 3); bias/gamma/beta: (C_out,).
    Returns (B, C_out, H, W) float32.
    """
    B, C_in, H, W = x.shape
    C_out = weight.shape[0]
    assert weight.shape == (C_out, C_in, 3, 3)
    assert bias.shape == (C_out,) and gamma.shape == (C_out,) and beta.shape == (C_out,)
    assert C_out % 4 == 0, "GroupNorm(4, C_out) requires C_out % 4 == 0"

    HW = H * W
    K = 9 * C_in
    K_pad = ((K + 127) // 128) * 128  # zero-pad contraction dim to the lane/MXU tile

    xf = x.astype(jnp.float32)
    x_sp = jnp.pad(xf, ((0, 0), (0, 0), (1, 1), (1, 1)))       # conv zero padding

    # im2col: taps ordered (dy, dx) row-major, channels fastest -> K = 9*C_in.
    patches = [x_sp[:, :, dy:dy + H, dx:dx + W]
               for dy in range(3) for dx in range(3)]           # 9 x (B, C_in, H, W)
    x_col = jnp.stack(patches, axis=1).reshape(B, K, HW)        # (B, K, HW)
    x_col = jnp.pad(x_col, ((0, 0), (0, K_pad - K), (0, 0)))    # zero-pad K -> K_pad

    # Weights flattened with the identical (tap, channel) ordering, then padded.
    w_mat = jnp.transpose(weight.astype(jnp.float32), (0, 2, 3, 1)).reshape(C_out, K)
    w_mat = jnp.pad(w_mat, ((0, 0), (0, K_pad - K)))

    b2 = bias.astype(jnp.float32).reshape(C_out, 1)
    g2 = gamma.astype(jnp.float32).reshape(C_out, 1)
    be2 = beta.astype(jnp.float32).reshape(C_out, 1)

    out = pl.pallas_call(
        _conv_block_kernel,
        out_shape=jax.ShapeDtypeStruct((B, C_out, HW), jnp.float32),
        grid=(B,),
        in_specs=[
            pl.BlockSpec((1, K_pad, HW), lambda b: (b, 0, 0)),  # per-sample unfolded x
            pl.BlockSpec((C_out, K_pad), lambda b: (0, 0)),     # weights (resident)
            pl.BlockSpec((C_out, 1), lambda b: (0, 0)),         # bias
            pl.BlockSpec((C_out, 1), lambda b: (0, 0)),         # gamma
            pl.BlockSpec((C_out, 1), lambda b: (0, 0)),         # beta
        ],
        out_specs=pl.BlockSpec((1, C_out, HW), lambda b: (b, 0, 0)),
        compiler_params=pltpu.CompilerParams(
            dimension_semantics=("parallel",)),                 # 2-TC sharding on v7x
    )(x_col, w_mat, b2, g2, be2)

    return out.reshape(B, C_out, H, W)


def _conv_block_ref(x, weight, bias, gamma, beta):
    """Pure-JAX reference matching PyTorch Conv2d(3,pad=1) + GroupNorm(4) + SiLU."""
    out = jax.lax.conv_general_dilated(
        x.astype(jnp.float32), weight.astype(jnp.float32),
        window_strides=(1, 1), padding=((1, 1), (1, 1)),
        dimension_numbers=("NCHW", "OIHW", "NCHW"))
    out = out + bias[None, :, None, None]
    B, C, H, W = out.shape
    G = 4
    y = out.reshape(B, G, C // G, H, W)
    mean = y.mean(axis=(2, 3, 4), keepdims=True)
    var = y.var(axis=(2, 3, 4), keepdims=True)
    y = (y - mean) / jnp.sqrt(var + 1e-5)
    y = y.reshape(B, C, H, W)
    y = y * gamma[None, :, None, None] + beta[None, :, None, None]
    return y * jax.nn.sigmoid(y)


if __name__ == "__main__":
    B, C_in, C_out, H, W = 2, 4, 8, 16, 16

    key = jax.random.PRNGKey(0)
    kx, kw, kb, kg, kbe = jax.random.split(key, 5)
    x = jax.random.normal(kx, (B, C_in, H, W), dtype=jnp.float32)
    weight = 0.1 * jax.random.normal(kw, (C_out, C_in, 3, 3), dtype=jnp.float32)
    bias = 0.1 * jax.random.normal(kb, (C_out,), dtype=jnp.float32)
    gamma = 1.0 + 0.1 * jax.random.normal(kg, (C_out,), dtype=jnp.float32)
    beta = 0.1 * jax.random.normal(kbe, (C_out,), dtype=jnp.float32)

    out = conv_block(x, weight, bias, gamma, beta)
    out = jax.block_until_ready(out)

    ref = _conv_block_ref(x, weight, bias, gamma, beta)
    assert out.shape == (B, C_out, H, W)
    assert out.dtype == jnp.float32
    max_err = float(jnp.max(jnp.abs(out - ref)))
    assert max_err < 1e-4, f"mismatch vs reference: max_err={max_err}"
    print("KERNEL_OK")
</pallas_src>

<mosaic_0001>
module attributes {stable_mosaic.version = 11 : i64} {
  func.func @_conv_block_kernel(%arg0: i32, %arg1: memref<1x128x256xf32, #tpu.memory_space<vmem>>, %arg2: memref<8x128xf32, #tpu.memory_space<vmem>>, %arg3: memref<8x1xf32, #tpu.memory_space<vmem>>, %arg4: memref<8x1xf32, #tpu.memory_space<vmem>>, %arg5: memref<8x1xf32, #tpu.memory_space<vmem>>, %arg6: memref<1x8x256xf32, #tpu.memory_space<vmem>>) attributes {dimension_semantics = [#tpu.dimension_semantics<parallel>], iteration_bounds = array<i64: 2>, scalar_prefetch = 0 : i64, scratch_operands = 0 : i64, tpu.core_type = #tpu.core_type<tc>, window_params = [{transform_indices = @transform_0, window_bounds = array<i64: 1, 128, 256>}, {pipeline_mode = #tpu.pipeline_mode<synchronous>, transform_indices = @transform_1, window_bounds = array<i64: 8, 128>}, {pipeline_mode = #tpu.pipeline_mode<synchronous>, transform_indices = @transform_2, window_bounds = array<i64: 8, 1>}, {pipeline_mode = #tpu.pipeline_mode<synchronous>, transform_indices = @transform_3, window_bounds = array<i64: 8, 1>}, {pipeline_mode = #tpu.pipeline_mode<synchronous>, transform_indices = @transform_4, window_bounds = array<i64: 8, 1>}, {transform_indices = @transform_5, window_bounds = array<i64: 1, 8, 256>}]} {
    %c0 = arith.constant 0 : index
    %c0_0 = arith.constant 0 : index
    %0 = vector.load %arg2[%c0, %c0_0] : memref<8x128xf32, #tpu.memory_space<vmem>>, vector<8x128xf32>
    %c0_1 = arith.constant 0 : index
    %c0_2 = arith.constant 0 : index
    %c0_3 = arith.constant 0 : index
    %1 = vector.load %arg1[%c0_1, %c0_2, %c0_3] : memref<1x128x256xf32, #tpu.memory_space<vmem>>, vector<1x128x256xf32>
    %2 = vector.shape_cast %1 : vector<1x128x256xf32> to vector<128x256xf32>
    %cst = arith.constant dense<0.000000e+00> : vector<8x256xf32>
    %3 = tpu.matmul %0, %2, %cst {dimension_numbers = #tpu.dot_dimension_numbers<[1], [0], [0], [1], [0, 0, 1, 1], [], []>} : vector<8x128xf32>, vector<128x256xf32>, vector<8x256xf32> -> vector<8x256xf32>
    %c0_4 = arith.constant 0 : index
    %c0_5 = arith.constant 0 : index
    %4 = vector.load %arg3[%c0_4, %c0_5] : memref<8x1xf32, #tpu.memory_space<vmem>>, vector<8x1xf32>
    %5 = vector.broadcast %4 : vector<8x1xf32> to vector<8x256xf32>
    %6 = arith.addf %3, %5 : vector<8x256xf32>
    %7 = tpu.iota {dimensions = array<i32: 0>} : vector<8x1xi32>
    %cst_6 = arith.constant dense<0.000000e+00> : vector<8xf32>
    %8 = vector.multi_reduction <add>, %6, %cst_6 [1] : vector<8x256xf32> to vector<8xf32>
    %9 = vector.shape_cast %8 : vector<8xf32> to vector<8x1xf32>
    %cst_7 = arith.constant 0.000000e+00 : f32
    %10 = vector.broadcast %cst_7 : f32 to vector<8x1xf32>
    %11 = vector.extract_strided_slice %9 {offsets = [0, 0], sizes = [2, 1], strides = [1, 1]} : vector<8x1xf32> to vector<2x1xf32>
    %12 = vector.shape_cast %11 : vector<2x1xf32> to vector<1x2x1xf32>
    %cst_8 = arith.constant dense<0.000000e+00> : vector<1xf32>
    %13 = vector.multi_reduction <add>, %12, %cst_8 [1, 2] : vector<1x2x1xf32> to vector<1xf32>
    %14 = vector.shape_cast %13 : vector<1xf32> to vector<1x1x1xf32>
    %15 = vector.extract %14[0, 0, 0] : f32 from vector<1x1x1xf32>
    %cst_9 = arith.constant 0.001953125 : f32
    %16 = arith.mulf %15, %cst_9 : f32
    %c0_i32 = arith.constant 0 : i32
    %17 = vector.broadcast %c0_i32 : i32 to vector<8x1xi32>
    %18 = arith.cmpi sge, %7, %17 : vector<8x1xi32>
    %c2_i32 = arith.constant 2 : i32
    %19 = vector.broadcast %c2_i32 : i32 to vector<8x1xi32>
    %20 = arith.cmpi slt, %7, %19 : vector<8x1xi32>
    %21 = arith.andi %18, %20 : vector<8x1xi1>
    %22 = vector.broadcast %16 : f32 to vector<8x1xf32>
    %23 = arith.select %21, %22, %10 : vector<8x1xi1>, vector<8x1xf32>
    %24 = vector.extract_strided_slice %9 {offsets = [2, 0], sizes = [2, 1], strides = [1, 1]} : vector<8x1xf32> to vector<2x1xf32>
    %25 = vector.shape_cast %24 : vector<2x1xf32> to vector<1x2x1xf32>
    %cst_10 = arith.constant dense<0.000000e+00> : vector<1xf32>
    %26 = vector.multi_reduction <add>, %25, %cst_10 [1, 2] : vector<1x2x1xf32> to vector<1xf32>
    %27 = vector.shape_cast %26 : vector<1xf32> to vector<1x1x1xf32>
    %28 = vector.extract %27[0, 0, 0] : f32 from vector<1x1x1xf32>
    %cst_11 = arith.constant 0.001953125 : f32
    %29 = arith.mulf %28, %cst_11 : f32
    %c2_i32_12 = arith.constant 2 : i32
    %30 = vector.broadcast %c2_i32_12 : i32 to vector<8x1xi32>
    %31 = arith.cmpi sge, %7, %30 : vector<8x1xi32>
    %c4_i32 = arith.constant 4 : i32
    %32 = vector.broadcast %c4_i32 : i32 to vector<8x1xi32>
    %33 = arith.cmpi slt, %7, %32 : vector<8x1xi32>
    %34 = arith.andi %31, %33 : vector<8x1xi1>
    %35 = vector.broadcast %29 : f32 to vector<8x1xf32>
    %36 = arith.select %34, %35, %23 : vector<8x1xi1>, vector<8x1xf32>
    %37 = vector.extract_strided_slice %9 {offsets = [4, 0], sizes = [2, 1], strides = [1, 1]} : vector<8x1xf32> to vector<2x1xf32>
    %38 = vector.shape_cast %37 : vector<2x1xf32> to vector<1x2x1xf32>
    %cst_13 = arith.constant dense<0.000000e+00> : vector<1xf32>
    %39 = vector.multi_reduction <add>, %38, %cst_13 [1, 2] : vector<1x2x1xf32> to vector<1xf32>
    %40 = vector.shape_cast %39 : vector<1xf32> to vector<1x1x1xf32>
    %41 = vector.extract %40[0, 0, 0] : f32 from vector<1x1x1xf32>
    %cst_14 = arith.constant 0.001953125 : f32
    %42 = arith.mulf %41, %cst_14 : f32
    %c4_i32_15 = arith.constant 4 : i32
    %43 = vector.broadcast %c4_i32_15 : i32 to vector<8x1xi32>
    %44 = arith.cmpi sge, %7, %43 : vector<8x1xi32>
    %c6_i32 = arith.constant 6 : i32
    %45 = vector.broadcast %c6_i32 : i32 to vector<8x1xi32>
    %46 = arith.cmpi slt, %7, %45 : vector<8x1xi32>
    %47 = arith.andi %44, %46 : vector<8x1xi1>
    %48 = vector.broadcast %42 : f32 to vector<8x1xf32>
    %49 = arith.select %47, %48, %36 : vector<8x1xi1>, vector<8x1xf32>
    %50 = vector.extract_strided_slice %9 {offsets = [6, 0], sizes = [2, 1], strides = [1, 1]} : vector<8x1xf32> to vector<2x1xf32>
    %51 = vector.shape_cast %50 : vector<2x1xf32> to vector<1x2x1xf32>
    %cst_16 = arith.constant dense<0.000000e+00> : vector<1xf32>
    %52 = vector.multi_reduction <add>, %51, %cst_16 [1, 2] : vector<1x2x1xf32> to vector<1xf32>
    %53 = vector.shape_cast %52 : vector<1xf32> to vector<1x1x1xf32>
    %54 = vector.extract %53[0, 0, 0] : f32 from vector<1x1x1xf32>
    %cst_17 = arith.constant 0.001953125 : f32
    %55 = arith.mulf %54, %cst_17 : f32
    %c6_i32_18 = arith.constant 6 : i32
    %56 = vector.broadcast %c6_i32_18 : i32 to vector<8x1xi32>
    %57 = arith.cmpi sge, %7, %56 : vector<8x1xi32>
    %c8_i32 = arith.constant 8 : i32
    %58 = vector.broadcast %c8_i32 : i32 to vector<8x1xi32>
    %59 = arith.cmpi slt, %7, %58 : vector<8x1xi32>
    %60 = arith.andi %57, %59 : vector<8x1xi1>
    %61 = vector.broadcast %55 : f32 to vector<8x1xf32>
    %62 = arith.select %60, %61, %49 : vector<8x1xi1>, vector<8x1xf32>
    %63 = vector.broadcast %62 : vector<8x1xf32> to vector<8x256xf32>
    %64 = arith.subf %6, %63 : vector<8x256xf32>
    %65 = arith.mulf %64, %64 : vector<8x256xf32>
    %cst_19 = arith.constant dense<0.000000e+00> : vector<8xf32>
    %66 = vector.multi_reduction <add>, %65, %cst_19 [1] : vector<8x256xf32> to vector<8xf32>
    %67 = vector.shape_cast %66 : vector<8xf32> to vector<8x1xf32>
    %cst_20 = arith.constant 0.000000e+00 : f32
    %68 = vector.broadcast %cst_20 : f32 to vector<8x1xf32>
    %69 = vector.extract_strided_slice %67 {offsets = [0, 0], sizes = [2, 1], strides = [1, 1]} : vector<8x1xf32> to vector<2x1xf32>
    %70 = vector.shape_cast %69 : vector<2x1xf32> to vector<1x2x1xf32>
    %cst_21 = arith.constant dense<0.000000e+00> : vector<1xf32>
    %71 = vector.multi_reduction <add>, %70, %cst_21 [1, 2] : vector<1x2x1xf32> to vector<1xf32>
    %72 = vector.shape_cast %71 : vector<1xf32> to vector<1x1x1xf32>
    %73 = vector.extract %72[0, 0, 0] : f32 from vector<1x1x1xf32>
    %cst_22 = arith.constant 0.001953125 : f32
    %74 = arith.mulf %73, %cst_22 : f32
    %c0_i32_23 = arith.constant 0 : i32
    %75 = vector.broadcast %c0_i32_23 : i32 to vector<8x1xi32>
    %76 = arith.cmpi sge, %7, %75 : vector<8x1xi32>
    %c2_i32_24 = arith.constant 2 : i32
    %77 = vector.broadcast %c2_i32_24 : i32 to vector<8x1xi32>
    %78 = arith.cmpi slt, %7, %77 : vector<8x1xi32>
    %79 = arith.andi %76, %78 : vector<8x1xi1>
    %80 = vector.broadcast %74 : f32 to vector<8x1xf32>
    %81 = arith.select %79, %80, %68 : vector<8x1xi1>, vector<8x1xf32>
    %82 = vector.extract_strided_slice %67 {offsets = [2, 0], sizes = [2, 1], strides = [1, 1]} : vector<8x1xf32> to vector<2x1xf32>
    %83 = vector.shape_cast %82 : vector<2x1xf32> to vector<1x2x1xf32>
    %cst_25 = arith.constant dense<0.000000e+00> : vector<1xf32>
    %84 = vector.multi_reduction <add>, %83, %cst_25 [1, 2] : vector<1x2x1xf32> to vector<1xf32>
    %85 = vector.shape_cast %84 : vector<1xf32> to vector<1x1x1xf32>
    %86 = vector.extract %85[0, 0, 0] : f32 from vector<1x1x1xf32>
    %cst_26 = arith.constant 0.001953125 : f32
    %87 = arith.mulf %86, %cst_26 : f32
    %c2_i32_27 = arith.constant 2 : i32
    %88 = vector.broadcast %c2_i32_27 : i32 to vector<8x1xi32>
    %89 = arith.cmpi sge, %7, %88 : vector<8x1xi32>
    %c4_i32_28 = arith.constant 4 : i32
    %90 = vector.broadcast %c4_i32_28 : i32 to vector<8x1xi32>
    %91 = arith.cmpi slt, %7, %90 : vector<8x1xi32>
    %92 = arith.andi %89, %91 : vector<8x1xi1>
    %93 = vector.broadcast %87 : f32 to vector<8x1xf32>
    %94 = arith.select %92, %93, %81 : vector<8x1xi1>, vector<8x1xf32>
    %95 = vector.extract_strided_slice %67 {offsets = [4, 0], sizes = [2, 1], strides = [1, 1]} : vector<8x1xf32> to vector<2x1xf32>
    %96 = vector.shape_cast %95 : vector<2x1xf32> to vector<1x2x1xf32>
    %cst_29 = arith.constant dense<0.000000e+00> : vector<1xf32>
    %97 = vector.multi_reduction <add>, %96, %cst_29 [1, 2] : vector<1x2x1xf32> to vector<1xf32>
    %98 = vector.shape_cast %97 : vector<1xf32> to vector<1x1x1xf32>
    %99 = vector.extract %98[0, 0, 0] : f32 from vector<1x1x1xf32>
    %cst_30 = arith.constant 0.001953125 : f32
    %100 = arith.mulf %99, %cst_30 : f32
    %c4_i32_31 = arith.constant 4 : i32
    %101 = vector.broadcast %c4_i32_31 : i32 to vector<8x1xi32>
    %102 = arith.cmpi sge, %7, %101 : vector<8x1xi32>
    %c6_i32_32 = arith.constant 6 : i32
    %103 = vector.broadcast %c6_i32_32 : i32 to vector<8x1xi32>
    %104 = arith.cmpi slt, %7, %103 : vector<8x1xi32>
    %105 = arith.andi %102, %104 : vector<8x1xi1>
    %106 = vector.broadcast %100 : f32 to vector<8x1xf32>
    %107 = arith.select %105, %106, %94 : vector<8x1xi1>, vector<8x1xf32>
    %108 = vector.extract_strided_slice %67 {offsets = [6, 0], sizes = [2, 1], strides = [1, 1]} : vector<8x1xf32> to vector<2x1xf32>
    %109 = vector.shape_cast %108 : vector<2x1xf32> to vector<1x2x1xf32>
    %cst_33 = arith.constant dense<0.000000e+00> : vector<1xf32>
    %110 = vector.multi_reduction <add>, %109, %cst_33 [1, 2] : vector<1x2x1xf32> to vector<1xf32>
    %111 = vector.shape_cast %110 : vector<1xf32> to vector<1x1x1xf32>
    %112 = vector.extract %111[0, 0, 0] : f32 from vector<1x1x1xf32>
    %cst_34 = arith.constant 0.001953125 : f32
    %113 = arith.mulf %112, %cst_34 : f32
    %c6_i32_35 = arith.constant 6 : i32
    %114 = vector.broadcast %c6_i32_35 : i32 to vector<8x1xi32>
    %115 = arith.cmpi sge, %7, %114 : vector<8x1xi32>
    %c8_i32_36 = arith.constant 8 : i32
    %116 = vector.broadcast %c8_i32_36 : i32 to vector<8x1xi32>
    %117 = arith.cmpi slt, %7, %116 : vector<8x1xi32>
    %118 = arith.andi %115, %117 : vector<8x1xi1>
    %119 = vector.broadcast %113 : f32 to vector<8x1xf32>
    %120 = arith.select %118, %119, %107 : vector<8x1xi1>, vector<8x1xf32>
    %cst_37 = arith.constant 9.99999974E-6 : f32
    %121 = vector.broadcast %cst_37 : f32 to vector<8x1xf32>
    %122 = arith.addf %120, %121 : vector<8x1xf32>
    %123 = math.rsqrt %122 : vector<8x1xf32>
    %c0_38 = arith.constant 0 : index
    %c0_39 = arith.constant 0 : index
    %124 = vector.load %arg4[%c0_38, %c0_39] : memref<8x1xf32, #tpu.memory_space<vmem>>, vector<8x1xf32>
    %125 = arith.mulf %123, %124 : vector<8x1xf32>
    %126 = vector.broadcast %125 : vector<8x1xf32> to vector<8x256xf32>
    %127 = arith.mulf %64, %126 : vector<8x256xf32>
    %c0_40 = arith.constant 0 : index
    %c0_41 = arith.constant 0 : index
    %128 = vector.load %arg5[%c0_40, %c0_41] : memref<8x1xf32, #tpu.memory_space<vmem>>, vector<8x1xf32>
    %129 = vector.broadcast %128 : vector<8x1xf32> to vector<8x256xf32>
    %130 = arith.addf %127, %129 : vector<8x256xf32>
    %131 = arith.negf %130 : vector<8x256xf32>
    %132 = math.exp %131 : vector<8x256xf32>
    %cst_42 = arith.constant 1.000000e+00 : f32
    %133 = vector.broadcast %cst_42 : f32 to vector<8x256xf32>
    %134 = arith.addf %133, %132 : vector<8x256xf32>
    %135 = arith.divf %133, %134 : vector<8x256xf32>
    %136 = arith.mulf %130, %135 : vector<8x256xf32>
    %c0_43 = arith.constant 0 : index
    %c0_44 = arith.constant 0 : index
    %c0_45 = arith.constant 0 : index
    %137 = vector.load %arg6[%c0_43, %c0_44, %c0_45] : memref<1x8x256xf32, #tpu.memory_space<vmem>>, vector<1x8x256xf32>
    %138 = vector.shape_cast %137 : vector<1x8x256xf32> to vector<8x256xf32>
    %139 = vector.shape_cast %136 : vector<8x256xf32> to vector<1x8x256xf32>
    tpu.vector_store %arg6[%c0_43, %c0_44, %c0_45], %139 {strides = array<i32>} : memref<1x8x256xf32, #tpu.memory_space<vmem>>, vector<1x8x256xf32>,
    return
  }
  func.func @transform_0(%arg0: i32) -> (i32, i32, i32) {
    %c0_i32 = arith.constant 0 : i32
    %c0_i32_0 = arith.constant 0 : i32
    %c0_i32_1 = arith.constant 0 : i32
    return %arg0, %c0_i32, %c0_i32_0 : i32, i32, i32
  }
  func.func @transform_1(%arg0: i32) -> (i32, i32) {
    %c0_i32 = arith.constant 0 : i32
    %c0_i32_0 = arith.constant 0 : i32
    %c0_i32_1 = arith.constant 0 : i32
    return %c0_i32, %c0_i32_0 : i32, i32
  }
  func.func @transform_2(%arg0: i32) -> (i32, i32) {
    %c0_i32 = arith.constant 0 : i32
    %c0_i32_0 = arith.constant 0 : i32
    %c0_i32_1 = arith.constant 0 : i32
    return %c0_i32, %c0_i32_0 : i32, i32
  }
  func.func @transform_3(%arg0: i32) -> (i32, i32) {
    %c0_i32 = arith.constant 0 : i32
    %c0_i32_0 = arith.constant 0 : i32
    %c0_i32_1 = arith.constant 0 : i32
    return %c0_i32, %c0_i32_0 : i32, i32
  }
  func.func @transform_4(%arg0: i32) -> (i32, i32) {
    %c0_i32 = arith.constant 0 : i32
    %c0_i32_0 = arith.constant 0 : i32
    %c0_i32_1 = arith.constant 0 : i32
    return %c0_i32, %c0_i32_0 : i32, i32
  }
  func.func @transform_5(%arg0: i32) -> (i32, i32, i32) {
    %c0_i32 = arith.constant 0 : i32
    %c0_i32_0 = arith.constant 0 : i32
    %c0_i32_1 = arith.constant 0 : i32
    return %arg0, %c0_i32, %c0_i32_0 : i32, i32, i32
  }
}

</mosaic_0001>

<bundles_post_ra>
// kernel: tpu_custom_call.1
= control target key start
LH: loop header
LB: loop body
LE: loop exit
PB: predicated region body
PF: predicated region fallthrough
CT: control target
= control target key end

     0   :  { %10 = vsyncpa [#allocation3], 0  ;;  %s1143_s0 = inlined_call_operand.hbm [shape: f32[2,128,256], index: 0, kind: input, shape index: {}]   ;;  %s1144_s1 = inlined_call_operand.vmem [shape: f32[8,128], index: 1, kind: input, shape index: {}]   ;;  %s1145_s2 = inlined_call_operand.vmem [shape: f32[8,1], index: 2, kind: input, shape index: {}]   ;;  %s1146_s3 = inlined_call_operand.vmem [shape: f32[8,1], index: 3, kind: input, shape index: {}]   ;;  %s1147_s4 = inlined_call_operand.vmem [shape: f32[8,1], index: 4, kind: input, shape index: {}]   ;;  %s1148_s5 = inlined_call_operand.hbm [shape: f32[2,8,256], index: 5, kind: output, shape index: {}]  }
   0x1   :  { %12 = vsyncpa [#allocation3 + $0x1], 0 }
   0x2   :  { %13 = vsyncpa [#allocation4], 0 }
   0x3   :  { %15 = vsyncpa [#allocation4 + $0x1], 0  ;;  %s878_s18 = smov 0   ;;  %s880_s19 = smov 0  }
   0x4   :  { %s882_s20 = smov 0   ;;  %s884_s21 = smov 0  }
   0x5 LB: > { %s899_s22 = sadd.s32 4294967295, %s840_s21   ;;  %s616_s23 = sadd.s32 4294967294, %s840_s21   ;;  %s840_s21 = sphi %s884_s21, %s1165_s21   ;;  %s836_s20 = sphi %s882_s20, %s1164_s20   ;;  %s832_s19 = sphi %s880_s19, %s1163_s19   ;;  %s828_s18 = sphi %s878_s18, %s1162_s18  }
   0x6   : > { %s903_s24 = sadd.s32 1, %s840_s21   ;;  %s28_s25 = sadd.s32 1, %s836_s20 }
   0x7   : > { %s25_s26 = ssub.s32 %s840_s21, %s903_s24  ;;  %p35_p0 = scmp.ne.s32.totalorder %s836_s20, %s832_s19 }
   0x8   : > { %p26_p1 = scmp.eq.s32.totalorder %s25_s26, 0  ;;  %p36_p2 = scmp.eq.s32.totalorder %s840_s21, 0 }
   0x9   : > { %p41_p3 = scmp.ne.s32.totalorder %s832_s19, %s828_s18  ;;  %p42_p4 = scmp.eq.s32.totalorder %s899_s22, 0 }
   0xa   : > { %s915_s27 = scalar_select %p26_p1, %s836_s20, %s28_s25  }
   0xb   : > { %p917_p5 = por %p36_p2, %p35_p0  ;;  %p921_p6 = por %p42_p4, %p41_p3 }
   0xc   : > { %p149_p7 = scmp.eq.s32.totalorder %s899_s22, 1  ;;  %p155_p8 = scmp.eq.s32.totalorder %s616_s23, 1 }
   0xd   : > { %p694_p10 = scmp.lt.s32.totalorder %s840_s21, 2  ;;  %s187_s7 = sand.u32 1, %s836_s20  }
   0xe   : > { %p928_p11 = por %p149_p7, %p35_p0  ;;  %p932_p12 = por %p155_p8, %p41_p3 }
   0xf   : > { %s632_s8 = sshll.u32 %s840_s21, 12  ;;  %s619_s9 = sshll.u32 %s187_s7, 8 }
  0x10   : > { %s1152_s30 = scalar_select %p928_p11, 1, 0 }
  0x11   : > { %s1153_s6 = scalar_select %p932_p12, 1, 0 }
  0x12   : > { %s941_s12 = scalar_lea.hbm %s1143_s0, %s632_s8  ;;  %s191_s13 = scalar_lea.vmem [#allocation2], %s619_s9 }
  0x13   : > { %s198_s14 = sshll.u32 %s191_s13, 4  ;;  %p945_p13 = pnand %p694_p10, %p917_p5  ;;  %s949_s14 = int_to_ptr.vmem [resolvable:$true] %s198_s14 }
  0x14   : > { %s951_s16 = scalar_lea.sflag [#allocation3], %s187_s7  ;;  %s744_s17 = scalar_lea.hbm %s941_s12, 4096 }
  0x15   : > { %p745_p0 = scmp.ne.s32.totalorder %s941_s12, %s744_s17  ;;  %p746_p1 = pneg %p945_p13 }
  0x16   : > { %s749_s26 = scalar_lea.hbm %s1143_s0, 8192  ;;  %p750_p4 = scmp.lt.u32.totalorder %s941_s12, %s1143_s0 }
  0x17   : > { %p747_p2 = pnand %p746_p1, %p745_p0  ;;  %p751_p5 = scmp.lt.u32.totalorder %s749_s26, %s744_s17 }
  0x18   : > { %p753_p8 = scmp.lt.u32.totalorder %s744_s17, %s941_s12 }
  0x19   : > { %p748_p3 = pneg %p747_p2  ;;  %p752_p7 = por %p751_p5, %p750_p4 }
  0x1b   : > { %p754_p10 = por %p753_p8, %p752_p7 }
  0x1d   : > { %p755_p9 = pnand %p754_p10, %p748_p3 }
  0x1f   : > { %758 = shalt.err (!%p755_p9)
}
  0x20   : > { %s759_s7 = scalar_lea.vmem %s949_s14, 4096  ;;  %s842_s9 = smov [#allocation2]  }
  0x21   : > { %p760_p0 = scmp.ne.s32.totalorder %s949_s14, %s759_s7  ;;  %s764_s10 = sshll.u32 %s842_s9, 4  ;;  %s765_s10 = int_to_ptr.vmem [resolvable:$false] %s764_s10 }
  0x22   : > { %s766_s11 = scalar_lea.vmem %s765_s10, 8192  ;;  %p767_p11 = scmp.lt.s32.totalorder %s949_s14, %s765_s10 }
  0x23   : > { %p762_p2 = pnand %p760_p0, %p746_p1  ;;  %p768_p4 = scmp.lt.s32.totalorder %s766_s11, %s759_s7 }
  0x25   : > { %p763_p12 = pneg %p762_p2  ;;  %p769_p5 = por %p768_p4, %p767_p11 }
  0x27   : > { %p770_p7 = pnand %p769_p5, %p763_p12 }
  0x29   : > { %773 = shalt.err (!%p770_p7)
}
  0x2a   : > { %s843_s13 = smov 256   ;;  %s844_s17 = smov 16  }
  0x2b   : > { %689 = dma.hbm_to_vmem [thread:$0]  (!%p945_p13), %s941_s12, 4096, %s949_s14, %s951_s16, %s843_s13, %s843_s13, %s844_s17  }
  0x2c   : > { %p622_p9 = scmp.ge.s32.totalorder %s840_s21, 1  ;;  %p206_p1 = scmp.lt.s32.totalorder %s840_s21, 3 }
  0x2e   : > { %p207_p3 = pnand %p622_p9, %p206_p1 }
  0x2f   : > { %s982_s23 = sand.u32 (!%p207_p3), 1, %s832_s19  }
  0x30   : > { %210 = sbr.rel (%p207_p3) target bundleno = 1230 (0x4ce), region = 40  ;;  %s623_s25 = sshll.u32 (!%p207_p3), %s982_s23, 8 }
  0x31   : > { %s213_s26 = scalar_lea.sflag (!%p207_p3), [#allocation3], %s982_s23  ;;  %s986_s28 = scalar_lea.vmem (!%p207_p3), [#allocation2], %s623_s25 }
  0x37   : > { %819 = dma.done.wait (%p921_p6), %s213_s26, 4096  }
  0x38   : > { %821 = vsyncadd (%p921_p6), %s213_s26, 4294963200  ;;  %v845_v0 = vmov 0.0   ;;  %v846_v1 = vmov 0   ;;  %v245_v2 = vld [vmem:[%s986_s28 + $0x8] sm:$0xff]  ;;  %v247_v3 = vld [vmem:[%s986_s28 + $0x18] sm:$0xff]  ;;  %vm358_vm0 = vcmask 1024  }
  0x39   : > { %346 = vmatprep.mubr.f32.mxu0 %v845_v0  ;;  %732 = vset.pattern.permute.xlu0 %v846_v1  ;;  %v244_v4 = vld [vmem:[%s986_s28] sm:$0xff]  ;;  %v634_v5 = vpack.c.bf16 %v247_v3, %v245_v2  ;;  %v246_v6 = vld [vmem:[%s986_s28 + $0x10] sm:$0xff]  ;;  %v249_v7 = vld [vmem:[%s986_s28 + $0x28] sm:$0xff]  ;;  %p1159_p11 = scmp.ne.s32.totalorder %s1152_s30, 0 }
  0x3a   : > { %733 = vset.pattern.permute.xlu1 %v846_v1  ;;  %v251_v8 = vld [vmem:[%s986_s28 + $0x38] sm:$0xff]  ;;  %v636_v9 = vpack.c.bf16 %v246_v6, %v244_v4  ;;  %v248_v11 = vld [vmem:[%s986_s28 + $0x20] sm:$0xff]  ;;  %v250_v12 = vld [vmem:[%s986_s28 + $0x30] sm:$0xff] }
  0x3b   : > { %v638_v10 = vpack.c.bf16 %v251_v8, %v249_v7  ;;  %v253_v13 = vld [vmem:[%s986_s28 + $0x48] sm:$0xff]  ;;  %635 = vmatprep.subr.bf16.mxu0 %v634_v5  ;;  %v255_v14 = vld [vmem:[%s986_s28 + $0x58] sm:$0xff]  ;;  %v640_v15 = vpack.c.bf16 %v250_v12, %v248_v11  ;;  %v252_v17 = vld [vmem:[%s986_s28 + $0x40] sm:$0xff] }
  0x3c   : > { %637 = vmatpush1.bf16.msra.mxu0 %v636_v9  ;;  %v642_v16 = vpack.c.bf16 %v255_v14, %v253_v13  ;;  %v254_v18 = vld [vmem:[%s986_s28 + $0x50] sm:$0xff]  ;;  %v257_v19 = vld [vmem:[%s986_s28 + $0x68] sm:$0xff]  ;;  %v259_v20 = vld [vmem:[%s986_s28 + $0x78] sm:$0xff] }
  0x3d   : > { %639 = vmatprep.subr.bf16.mxu0 %v638_v10  ;;  %v644_v21 = vpack.c.bf16 %v254_v18, %v252_v17  ;;  %v646_v22 = vpack.c.bf16 %v259_v20, %v257_v19  ;;  %v256_v23 = vld [vmem:[%s986_s28 + $0x60] sm:$0xff]  ;;  %v258_v24 = vld [vmem:[%s986_s28 + $0x70] sm:$0xff]  ;;  %v261_v25 = vld [vmem:[%s986_s28 + $0x88] sm:$0xff] }
  0x3e   : > { %v263_v26 = vld [vmem:[%s986_s28 + $0x98] sm:$0xff]  ;;  %v276_v27 = vld [vmem:[%s1145_s2] sm:$0xff]  ;;  %v648_v28 = vpack.c.bf16 %v258_v24, %v256_v23  ;;  %v262_v31 = vld [vmem:[%s986_s28 + $0x90] sm:$0xff] }
  0x3f   : > { %279 = vperm.xlu0 %732, %v276_v27   ;;  %v650_v29 = vpack.c.bf16 %v263_v26, %v261_v25  ;;  %v260_v30 = vld [vmem:[%s986_s28 + $0x80] sm:$0xff]  ;;  %v265_v32 = vld [vmem:[%s986_s28 + $0xa8] sm:$0xff]  ;;  %v267_v33 = vld [vmem:[%s986_s28 + $0xb8] sm:$0xff] }
  0x40   : > { %641 = vmatpush1.bf16.msra.mxu0 %v640_v15  ;;  %v652_v34 = vpack.c.bf16 %v262_v31, %v260_v30  ;;  %v654_v35 = vpack.c.bf16 %v267_v33, %v265_v32  ;;  %v264_v36 = vld [vmem:[%s986_s28 + $0xa0] sm:$0xff]  ;;  %v266_v37 = vld [vmem:[%s986_s28 + $0xb0] sm:$0xff]  ;;  %v269_v38 = vld [vmem:[%s986_s28 + $0xc8] sm:$0xff]  ;;  %v353_v30 = vlaneseq }
  0x41   : > { %643 = vmatprep.subr.bf16.mxu0 %v642_v16  ;;  %v271_v39 = vld [vmem:[%s986_s28 + $0xd8] sm:$0xff]  ;;  %v656_v40 = vpack.c.bf16 %v266_v37, %v264_v36  ;;  %v268_v42 = vld [vmem:[%s986_s28 + $0xc0] sm:$0xff]  ;;  %v270_v43 = vld [vmem:[%s986_s28 + $0xd0] sm:$0xff] }
  0x42   : > { %v658_v41 = vpack.c.bf16 %v271_v39, %v269_v38  ;;  %v273_v44 = vld [vmem:[%s986_s28 + $0xe8] sm:$0xff]  ;;  %v275_v45 = vld [vmem:[%s986_s28 + $0xf8] sm:$0xff]  ;;  %v660_v46 = vpack.c.bf16 %v270_v43, %v268_v42  ;;  %v272_v48 = vld [vmem:[%s986_s28 + $0xe0] sm:$0xff]  ;;  %v1040_v31 = vshrl.u32 %v353_v30, 7 }
  0x43   : > { %v662_v47 = vpack.c.bf16 %v275_v45, %v273_v44  ;;  %v274_v49 = vld [vmem:[%s986_s28 + $0xf0] sm:$0xff]  ;;  %v243_v51 = vld [vmem:[%s1144_s1] sm:$0xff] }
  0x44   : > { %645 = vmatpush1.bf16.msra.mxu0 %v644_v21  ;;  %v664_v50 = vpack.c.bf16 %v274_v49, %v272_v48  ;;  %vm389_vm1 = vcmp.ge.s32.totalorder %v1040_v31, 2  ;;  %vm390_vm2 = vcmp.lt.s32.totalorder %v1040_v31, 4  ;;  %vm407_vm3 = vcmp.ge.s32.totalorder %v1040_v31, 4 }
  0x45   : > { %647 = vmatprep.subr.bf16.mxu0 %v646_v22  ;;  %vm408_vm4 = vcmp.lt.s32.totalorder %v1040_v31, 6  ;;  %vm371_vm5 = vcmp.lt.s32.totalorder %v1040_v31, 2  ;;  %vm1047_vm6 = vmand %vm389_vm1, %vm390_vm2  ;;  %vm425_vm8 = vcmp.ge.s32.totalorder %v1040_v31, 6 }
  0x46   : > { %vm1051_vm7 = vmand %vm407_vm3, %vm408_vm4 }
  0x48   : > { %649 = vmatpush1.bf16.msra.mxu0 %v648_v28 }
  0x49   : > { %651 = vmatprep.subr.bf16.mxu0 %v650_v29 }
  0x4c   : > { %653 = vmatpush1.bf16.msra.mxu0 %v652_v34 }
  0x4d   : > { %655 = vmatprep.subr.bf16.mxu0 %v654_v35 }
  0x50   : > { %657 = vmatpush1.bf16.msra.mxu0 %v656_v40 }
  0x51   : > { %659 = vmatprep.subr.bf16.mxu0 %v658_v41 }
  0x54   : > { %661 = vmatpush1.bf16.msra.mxu0 %v660_v46 }
  0x55   : > { %663 = vmatprep.subr.bf16.mxu0 %v662_v47 }
  0x58   : > { %665 = vmatpush1.bf16.msra.mxu0 %v664_v50 }
  0x5b   : > { %347 = vmatmul.mubr.f32.vlgmr.msra.gmra.mrb[0].mxu0 %v243_v51 }
  0xbe   : > { %v280_v52 = vpop.permute.xlu0 %279 }
 0x12e   : > { %v348_v53 = vpop.f32.mrb[0].mxu0 }
 0x12f   : > { %v1030_v54 = vadd.f32 %v348_v53, %v280_v52  ;;  %v350_v55 = vpop.f32.mrb[1].mxu0 }
 0x130   : > { %v1032_v56 = vadd.f32 %v350_v55, %v280_v52  ;;  %v507_v55 = vld [vmem:[%s1147_s4] sm:$0xff] }
 0x132   : > { %v355_v57 = vadd.f32 %v1032_v56, %v1030_v54 }
 0x134   : > { %356 = vadd.xlane.f32.xlu0 %v355_v57 }
 0x1c1   : > { %v357_v58 = vpop.xlane.xlu0 %356 }
 0x1c2   : > { %v359_v59 = vsel %vm358_vm0, %v357_v58, 0.0  ;;  %v376_v60 = vrot.slane %v357_v58, 2  ;;  %v394_v62 = vrot.slane %v357_v58, 4  ;;  %v412_v0 = vrot.slane %v357_v58, 6 }
 0x1c3   : > { %360 = vadd.xlane.f32.xlu1 %v359_v59 }
 0x1c4   : > { %v378_v61 = vsel %vm358_vm0, %v376_v60, 0.0  ;;  %v396_v63 = vsel %vm358_vm0, %v394_v62, 0.0  ;;  %v414_v1 = vsel %vm358_vm0, %v412_v0, 0.0 }
 0x1c7   : > { %379 = vadd.xlane.f32.xlu1 %v378_v61 }
 0x1cb   : > { %397 = vadd.xlane.f32.xlu1 %v396_v63 }
 0x1cf   : > { %415 = vadd.xlane.f32.xlu1 %v414_v1 }
 0x250   : > { %v361_v2 = vpop.xlane.xlu1 %360 }
 0x251   : > { %v362_v3 = vrot.slane %v361_v2, 4 }
 0x253   : > { %v363_v4 = vadd.f32 %v362_v3, %v361_v2 }
 0x254   : > { %v380_v5 = vpop.xlane.xlu1 %379 }
 0x255   : > { %v364_v6 = vrot.slane %v363_v4, 2  ;;  %v381_v7 = vrot.slane %v380_v5, 4 }
 0x257   : > { %v382_v8 = vadd.f32 %v381_v7, %v380_v5  ;;  %v365_v9 = vadd.f32 %v364_v6, %v363_v4 }
 0x258   : > { %v398_v10 = vpop.xlane.xlu1 %397 }
 0x259   : > { %v383_v11 = vrot.slane %v382_v8, 2  ;;  %v399_v12 = vrot.slane %v398_v10, 4  ;;  %v366_v13 = vrot.slane %v365_v9, 1 }
 0x25b   : > { %v400_v14 = vadd.f32 %v399_v12, %v398_v10  ;;  %v367_v15 = vadd.f32 %v366_v13, %v365_v9  ;;  %v384_v16 = vadd.f32 %v383_v11, %v382_v8 }
 0x25c   : > { %v416_v17 = vpop.xlane.xlu1 %415 }
 0x25d   : > { %v401_v18 = vrot.slane %v400_v14, 2  ;;  %v417_v19 = vrot.slane %v416_v17, 4  ;;  %666 = vpush %v367_v15  ;;  %v385_v20 = vrot.slane %v384_v16, 1 }
 0x25f   : > { %v418_v21 = vadd.f32 %v417_v19, %v416_v17  ;;  %v386_v22 = vadd.f32 %v385_v20, %v384_v16  ;;  %v402_v23 = vadd.f32 %v401_v18, %v400_v14 }
 0x261   : > { %v419_v24 = vrot.slane %v418_v21, 2  ;;  %668 = vpush %v386_v22  ;;  %v403_v25 = vrot.slane %v402_v23, 1 }
 0x263   : > { %v404_v26 = vadd.f32 %v403_v25, %v402_v23  ;;  %v420_v27 = vadd.f32 %v419_v24, %v418_v21 }
 0x265   : > { %670 = vpush %v404_v26  ;;  %v421_v28 = vrot.slane %v420_v27, 1 }
 0x267   : > { %v422_v29 = vadd.f32 %v421_v28, %v420_v27 }
 0x269   : > { %672 = vpush %v422_v29  ;;  %v498_v29 = vld [vmem:[%s1146_s3] sm:$0xff] }
 0x28e   : > { %s667_s16 = spop %666 }
 0x28f   : > { %s369_s7 = smul.f32 0.001953125, %s667_s16 }
 0x291   : > { %v373_v32 = vstv %s369_s7 }
 0x292   : > { %s669_s8 = spop %668  ;;  %v374_v37 = vsel %vm371_vm5, %v373_v32, 0.0 }
 0x293   : > { %s388_s9 = smul.f32 0.001953125, %s669_s8 }
 0x295   : > { %v392_v34 = vstv %s388_s9 }
 0x296   : > { %s671_s10 = spop %670  ;;  %v393_v38 = vsel %vm1047_vm6, %v392_v34, %v374_v37 }
 0x297   : > { %s406_s11 = smul.f32 0.001953125, %s671_s10 }
 0x299   : > { %v410_v36 = vstv %s406_s11  ;;  %s624_s11 = sshll.u32 %s982_s23, 4 }
 0x29a   : > { %s673_s13 = spop %672  ;;  %v411_v39 = vsel %vm1051_vm7, %v410_v36, %v393_v38 }
 0x29b   : > { %s424_s17 = smul.f32 0.001953125, %s673_s13  ;;  %s633_s13 = sshll.u32 %s899_s22, 8 }
 0x29d   : > { %v428_v40 = vstv %s424_s17  ;;  %s242_s17 = scalar_lea.vmem [#allocation5], %s624_s11 }
 0x29e   : > { %v429_v41 = vsel %vm425_vm8, %v428_v40, %v411_v39  ;;  %s546_s25 = sshll.u32 %s242_s17, 4  ;;  %s1101_s25 = int_to_ptr.vmem [resolvable:$true] %s546_s25 }
 0x29f   : > { %v1065_v42 = vsub.f32 %v1030_v54, %v429_v41  ;;  %v1068_v43 = vsub.f32 %v1032_v56, %v429_v41  ;;  %s774_s22 = scalar_lea.vmem %s1101_s25, 256 }
 0x2a0   : > { %p775_p6 = scmp.ne.s32.totalorder %s1101_s25, %s774_s22 }
 0x2a1   : > { %v432_v44 = vmul.f32 %v1065_v42, %v1065_v42  ;;  %v433_v45 = vmul.f32 %v1068_v43, %v1068_v43 }
 0x2a2   : > { %p776_p12 = pnand %p775_p6, %p1159_p11 }
 0x2a3   : > { %v434_v46 = vadd.f32 %v433_v45, %v432_v44 }
 0x2a4   : > { %p777_p13 = pneg %p776_p12 }
 0x2a5   : > { %435 = vadd.xlane.f32.xlu1 %v434_v46 }
 0x332   : > { %v436_v47 = vpop.xlane.xlu1 %435 }
 0x333   : > { %v437_v48 = vsel %vm358_vm0, %v436_v47, 0.0  ;;  %v451_v49 = vrot.slane %v436_v47, 2  ;;  %v466_v51 = vrot.slane %v436_v47, 4  ;;  %v481_v53 = vrot.slane %v436_v47, 6 }
 0x334   : > { %438 = vadd.xlane.f32.xlu1 %v437_v48 }
 0x335   : > { %v453_v50 = vsel %vm358_vm0, %v451_v49, 0.0  ;;  %v468_v52 = vsel %vm358_vm0, %v466_v51, 0.0  ;;  %v483_v54 = vsel %vm358_vm0, %v481_v53, 0.0 }
 0x338   : > { %454 = vadd.xlane.f32.xlu1 %v453_v50 }
 0x33c   : > { %469 = vadd.xlane.f32.xlu1 %v468_v52 }
 0x340   : > { %484 = vadd.xlane.f32.xlu1 %v483_v54 }
 0x351   : > { %510 = vperm.xlu1 %733, %v507_v55  }
 0x3c1   : > { %v439_v56 = vpop.xlane.xlu1 %438 }
 0x3c2   : > { %v440_v57 = vrot.slane %v439_v56, 4 }
 0x3c4   : > { %v441_v58 = vadd.f32 %v440_v57, %v439_v56 }
 0x3c5   : > { %v455_v59 = vpop.xlane.xlu1 %454 }
 0x3c6   : > { %v442_v60 = vrot.slane %v441_v58, 2  ;;  %v456_v61 = vrot.slane %v455_v59, 4 }
 0x3c8   : > { %v457_v62 = vadd.f32 %v456_v61, %v455_v59  ;;  %v443_v63 = vadd.f32 %v442_v60, %v441_v58 }
 0x3c9   : > { %v470_v0 = vpop.xlane.xlu1 %469 }
 0x3ca   : > { %v458_v1 = vrot.slane %v457_v62, 2  ;;  %v471_v2 = vrot.slane %v470_v0, 4  ;;  %v444_v3 = vrot.slane %v443_v63, 1 }
 0x3cc   : > { %v472_v4 = vadd.f32 %v471_v2, %v470_v0  ;;  %v445_v5 = vadd.f32 %v444_v3, %v443_v63  ;;  %v459_v6 = vadd.f32 %v458_v1, %v457_v62 }
 0x3cd   : > { %v485_v7 = vpop.xlane.xlu1 %484 }
 0x3ce   : > { %v473_v8 = vrot.slane %v472_v4, 2  ;;  %v486_v9 = vrot.slane %v485_v7, 4  ;;  %674 = vpush %v445_v5  ;;  %v460_v10 = vrot.slane %v459_v6, 1 }
 0x3d0   : > { %v487_v11 = vadd.f32 %v486_v9, %v485_v7  ;;  %v461_v12 = vadd.f32 %v460_v10, %v459_v6  ;;  %v474_v13 = vadd.f32 %v473_v8, %v472_v4 }
 0x3d1   : > { %v511_v33 = vpop.permute.xlu1 %510 }
 0x3d2   : > { %v488_v14 = vrot.slane %v487_v11, 2  ;;  %676 = vpush %v461_v12  ;;  %v475_v15 = vrot.slane %v474_v13, 1 }
 0x3d4   : > { %v476_v16 = vadd.f32 %v475_v15, %v474_v13  ;;  %v489_v17 = vadd.f32 %v488_v14, %v487_v11 }
 0x3d6   : > { %678 = vpush %v476_v16  ;;  %v490_v18 = vrot.slane %v489_v17, 1 }
 0x3d8   : > { %v491_v19 = vadd.f32 %v490_v18, %v489_v17 }
 0x3da   : > { %680 = vpush %v491_v19 }
 0x3ff   : > { %s675_s28 = spop %674 }
 0x400   : > { %s447_s12 = smul.f32 0.001953125, %s675_s28 }
 0x402   : > { %v448_v20 = vstv %s447_s12  ;;  %s532_s12 = scalar_lea.sflag [#allocation4], %s982_s23 }
 0x403   : > { %s677_s29 = spop %676  ;;  %v449_v23 = vsel %vm371_vm5, %v448_v20, 0.0 }
 0x404   : > { %s463_s14 = smul.f32 0.001953125, %s677_s29  ;;  %s1099_s29 = scalar_lea.hbm %s1148_s5, %s633_s13 }
 0x406   : > { %v464_v21 = vstv %s463_s14  ;;  %s847_s14 = smov [#allocation5]  }
 0x407   : > { %s679_s15 = spop %678  ;;  %v465_v24 = vsel %vm1047_vm6, %v464_v21, %v449_v23 }
 0x408   : > { %s478_s16 = smul.f32 0.001953125, %s679_s15  ;;  %s778_s15 = sshll.u32 %s847_s14, 4  ;;  %s779_s15 = int_to_ptr.vmem [resolvable:$false] %s778_s15 }
 0x409   : > { %p781_p8 = scmp.lt.s32.totalorder %s1101_s25, %s779_s15 }
 0x40a   : > { %v479_v22 = vstv %s478_s16  ;;  %s780_s16 = scalar_lea.vmem %s779_s15, 512 }
 0x40b   : > { %s681_s8 = spop %680  ;;  %v480_v25 = vsel %vm1051_vm7, %v479_v22, %v465_v24  ;;  %p782_p10 = scmp.lt.s32.totalorder %s780_s16, %s774_s22 }
 0x40c   : > { %s493_s7 = smul.f32 0.001953125, %s681_s8 }
 0x40d   : > { %p783_p0 = por %p782_p10, %p781_p8 }
 0x40e   : > { %v494_v26 = vstv %s493_s7 }
 0x40f   : > { %v495_v27 = vsel %vm425_vm8, %v494_v26, %v480_v25  ;;  %p784_p2 = pnand %p783_p0, %p777_p13 }
 0x410   : > { %v496_v28 = vadd.f32 1e-05, %v495_v27 }
 0x412   : > { %734 = vrsqrt.f32 %v496_v28 }
 0x41c   : > { %v735_v30 = vpop.eup %734 }
 0x41d   : > { %v499_v32 = vmul.f32 %v735_v30, %v498_v29 }
 0x41f   : > { %502 = vperm.xlu0 %732, %v499_v32  }
 0x49e   : > { %v503_v34 = vpop.permute.xlu0 %502 }
 0x49f   : > { %v505_v35 = vmul.f32 %v503_v34, %v1065_v42  ;;  %v506_v36 = vmul.f32 %v503_v34, %v1068_v43 }
 0x4a1   : > { %v513_v37 = vadd.f32 %v511_v33, %v505_v35  ;;  %v514_v31 = vadd.f32 %v511_v33, %v506_v36 }
 0x4a3   : > { %v625_v38 = vmul.f32 -1.442695, %v513_v37  ;;  %v626_v39 = vmul.f32 -1.442695, %v514_v31 }
 0x4a5   : > { %736 = vpow2.f32 %v625_v38 }
 0x4a6   : > { %738 = vpow2.f32 %v626_v39 }
 0x4af   : > { %v737_v40 = vpop.eup %736 }
 0x4b0   : > { %v739_v41 = vpop.eup %738  ;;  %v521_v44 = vadd.f32 1.0, %v737_v40 }
 0x4b1   : > { %v522_v45 = vadd.f32 1.0, %v739_v41 }
 0x4b2   : > { %740 = vrcp.f32 %v521_v44 }
 0x4b3   : > { %742 = vrcp.f32 %v522_v45 }
 0x4bc   : > { %v741_v42 = vpop.eup %740 }
 0x4bd   : > { %v743_v43 = vpop.eup %742  ;;  %v527_v46 = vmul.f32 %v741_v42, %v513_v37 }
 0x4be   : > { %v528_v47 = vmul.f32 %v743_v43, %v514_v31 }
 0x4bf   : > { %529 = vst [vmem:[%s242_s17] sm:$0xff] %v527_v46 }
 0x4c0   : > { %530 = vst [vmem:[%s242_s17 + $0x8] sm:$0xff] %v528_v47 }
 0x4c1   : > { %787 = shalt.err (!%p784_p2)
}
 0x4c2   : > { %s788_s23 = scalar_lea.hbm %s1099_s29, 256  ;;  %s792_s9 = scalar_lea.hbm %s1148_s5, 512 }
 0x4c3   : > { %p789_p4 = scmp.ne.s32.totalorder %s1099_s29, %s788_s23  ;;  %p793_p9 = scmp.lt.u32.totalorder %s1099_s29, %s1148_s5 }
 0x4c4   : > { %p794_p1 = scmp.lt.u32.totalorder %s792_s9, %s788_s23  ;;  %p796_p6 = scmp.lt.u32.totalorder %s788_s23, %s1099_s29 }
 0x4c5   : > { %p790_p5 = pnand %p789_p4, %p1159_p11 }
 0x4c6   : > { %p795_p3 = por %p794_p1, %p793_p9 }
 0x4c7   : > { %p791_p7 = pneg %p790_p5 }
 0x4c8   : > { %p797_p12 = por %p796_p6, %p795_p3 }
 0x4ca   : > { %p798_p13 = pnand %p797_p12, %p791_p7 }
 0x4cc   : > { %801 = shalt.err (!%p798_p13)
}
 0x4cd   : > { %684 = dma.vmem_to_hbm [thread:$0]  (%p1159_p11), %s1101_s25, 256, %s1099_s29, %s532_s12  }
 0x4ce PF: > { %s558_s13 = sand.u32 1, %s828_s18   ;;  %p1160_p8 = scmp.ne.s32.totalorder %s1153_s6, 0 }
 0x4cf   : > { %p1161_p10 = scmp.ge.s32.totalorder %s840_s21, 2  ;;  %s559_s17 = scalar_lea.sflag [#allocation4], %s558_s13 }
 0x4d1   : > { %p691_p0 = pnand %p1161_p10, %p1160_p8 }
 0x4d3   : > { %823 = dma.done.wait (!%p691_p0), %s559_s17, 256  }
 0x4d4   : > { %825 = vsyncadd (!%p691_p0), %s559_s17, 4294967040  ;;  %p18_p2 = scmp.ge.s32.totalorder %s903_s24, 4   ;;  %s1162_s18 = smov %s832_s19 }
 0x4d5   : > { %s1163_s19 = smov %s836_s20  ;;  %s1164_s20 = smov %s915_s27 }
 0x4d6   : > { %s1165_s21 = smov %s903_s24  ;;  %20 = sbr.rel (!%p18_p2) target bundleno = 5 (0x5), region = 85 }
 0x4dd   :  { %564 = vsyncpa [#allocation3], 1 }
 0x4de   :  { %566 = vsyncpa [#allocation3 + $0x1], 1 }
 0x4df   :  { %567 = vsyncpa [#allocation4], 1 }
 0x4e0   :  { %569 = vsyncpa [#allocation4 + $0x1], 1 }

</bundles_post_ra>
